<compile_context>
chip_gen: v7x
topology: tpu7x:2x2x1
jax: 0.10.0
libtpu: 0.0.40
codegen_flags: <defaults>
</compile_context>

<pallas_src>
import math

import jax
import jax.numpy as jnp
from jax.experimental import pallas as pl
from jax.experimental.pallas import tpu as pltpu


# ----------------------------------------------------------------------------- kernels
def _make_kernel(pack: int):
    """Kernel body. pack == number of batch rows folded into the lane axis."""
    if pack == 1:
        def kernel(t_ref, tbl_ref, o_ref):
            # t_ref: (TG, 1) f32, tbl_ref: (2, L) f32 (row0=freq, row1=phase), o_ref: (TG, L)
            args = t_ref[...] * tbl_ref[0:1, :] + tbl_ref[1:2, :]          # VPU
            o_ref[...] = jnp.sin(args).astype(o_ref.dtype)                 # dense store
        return kernel

    def kernel(t_ref, tbl_ref, sel_ref, o_ref):
        # t_ref: (TG, pack) f32, sel_ref: (pack, L) 0/1 f32, tbl_ref: (2, L), o_ref: (TG, L)
        # Expand time values across their dim-wide lane slots on the (otherwise idle)
        # MXU.  Entries are 0/1 and precision=HIGHEST keeps f32 operands exact.
        t_exp = jnp.dot(
            t_ref[...], sel_ref[...],
            preferred_element_type=jnp.float32,
            precision=jax.lax.Precision.HIGHEST,
        )
        args = t_exp * tbl_ref[0:1, :] + tbl_ref[1:2, :]                   # VPU
        o_ref[...] = jnp.sin(args).astype(o_ref.dtype)
    return kernel


# ------------------------------------------------------------------------- block sizing
def _per_block_budget_bytes() -> int:
    """Generation-aware output-block byte budget (double-buffered by Pallas)."""
    try:
        kind = jax.devices()[0].device_kind.lower()
    except Exception:  # pragma: no cover
        kind = ""
    if ("v5 lite" in kind) or ("v5e" in kind) or ("v5litepod" in kind):
        return 5 << 20      # v5e: 16 MiB default scoped VMEM -> keep 2x block well under it
    return 8 << 20          # v6e / v7x: 32 MiB default scope


def _choose_block_rows(total_rows: int, lane_width: int, out_itemsize: int, align: int) -> int:
    """Rows per output block: big blocks (amortize ~0.35 us/step), dtype-aligned sublanes,
    and >= 2 parallel blocks when the problem is large enough (feeds both v7x TCs)."""
    budget_rows = max(align, _per_block_budget_bytes() // (out_itemsize * lane_width))
    if total_rows > budget_rows:
        return max(align, (budget_rows // align) * align)
    # Whole problem fits in one block: split into >= 2 blocks if that's cheap, so the
    # "parallel" grid axis can shard across both v7x TensorCores.
    total_bytes = total_rows * lane_width * out_itemsize
    if total_bytes >= (2 << 20) and total_rows >= 2 * align:
        half = (total_rows + 1) // 2
        return max(align, ((half + align - 1) // align) * align)
    return total_rows       # single block == full extent (always a legal BlockSpec)


# ------------------------------------------------------------------------------ wrapper
def _sinusoidal_jnp(time: jax.Array, dim: int) -> jax.Array:
    """Plain-jnp reference / small-problem fast path (matches the torch module exactly)."""
    half = dim // 2
    scale = math.log(10000.0) / (half - 1)
    freqs = jnp.exp(jnp.arange(half, dtype=jnp.float32) * (-scale))
    args = time.astype(jnp.float32)[:, None] * freqs[None, :]
    return jnp.concatenate([jnp.sin(args), jnp.cos(args)], axis=-1)


def sinusoidal_position_embeddings(time: jax.Array, dim: int, *,
                                   out_dtype=jnp.float32,
                                   force_pallas: bool = False) -> jax.Array:
    """time: (B,) -> (B, dim) sinusoidal embeddings (PyTorch module semantics)."""
    assert dim % 2 == 0 and dim >= 4, "dim must be even and >= 4"
    b = time.shape[0]
    half = dim // 2
    out_itemsize = jnp.dtype(out_dtype).itemsize

    # Small-problem fast path: at tiny sizes the kernel is pure launch/DMA overhead;
    # fuse into the downstream time-MLP or just compute with jnp.
    if not force_pallas and b * dim * out_itemsize < (1 << 20):
        return _sinusoidal_jnp(time, dim).astype(out_dtype)

    # --- constants hoisted out of the kernel -------------------------------------
    scale = math.log(10000.0) / (half - 1)
    freqs = jnp.exp(jnp.arange(half, dtype=jnp.float32) * (-scale))         # (half,)
    freq_row = jnp.concatenate([freqs, freqs])                              # (dim,)
    phase_row = jnp.concatenate(
        [jnp.zeros((half,), jnp.float32),
         jnp.full((half,), math.pi / 2, dtype=jnp.float32)])                # (dim,)

    # --- lane packing for narrow dim (pad B up to a multiple of pack) ------------
    pack = max(1, 128 // dim) if dim < 128 else 1
    b_pad = -(-b // pack) * pack
    t_flat = time.astype(jnp.float32)
    if b_pad != b:
        t_flat = jnp.pad(t_flat, (0, b_pad - b))
    rows, lanes = b_pad // pack, pack * dim
    t_packed = t_flat.reshape(rows, pack)

    # Merged (2, lanes) freq/phase table: row 0 = freq, row 1 = phase.
    tbl = jnp.stack([jnp.tile(freq_row, (pack,)), jnp.tile(phase_row, (pack,))])

    operands = [t_packed, tbl]
    in_specs = [
        pl.BlockSpec((None, pack), lambda i: (i, 0))._replace(block_shape=(None, pack))
        if False else pl.BlockSpec((0, 0), None)  # placeholder, replaced below
    ]
    # (build specs cleanly below — the placeholder above is never used)
    del in_specs

    # --- batch grid (pipelined, megacore-parallel) --------------------------------
    align = max(8, 32 // out_itemsize)              # 8 for f32, 16 for bf16, 32 for int8/fp8
    tg = _choose_block_rows(rows, lanes, out_itemsize, align)
    grid = (pl.cdiv(rows, tg),)

    in_specs = [
        pl.BlockSpec((tg, pack), lambda i: (i, 0)),      # time block
        pl.BlockSpec((2, lanes), lambda i: (0, 0)),      # merged freq/phase table
    ]
    if pack > 1:
        # Constant 0/1 one-hot selector: sel[r, j] = 1 iff lane j belongs to group row r.
        sel = ((jnp.arange(lanes, dtype=jnp.int32) // dim)[None, :]
               == jnp.arange(pack, dtype=jnp.int32)[:, None]).astype(jnp.float32)
        operands.append(sel)
        in_specs.append(pl.BlockSpec((pack, lanes), lambda i: (0, 0)))

    # Explicit VMEM budget: double-buffered output block dominates; add margin.
    need = 2 * (tg * lanes * out_itemsize + tg * pack * 4 + 2 * lanes * 4
                + (pack * lanes * 4 if pack > 1 else 0))
    vmem_limit = int(min(max(2 * need, 16 << 20), 30 << 20))

    out = pl.pallas_call(
        _make_kernel(pack),
        out_shape=jax.ShapeDtypeStruct((rows, lanes), out_dtype),
        grid=grid,
        in_specs=in_specs,
        out_specs=pl.BlockSpec((tg, lanes), lambda i: (i, 0)),
        compiler_params=pltpu.CompilerParams(
            dimension_semantics=("parallel",),
            vmem_limit_bytes=vmem_limit,
        ),
    )(*operands)

    # Undo lane packing / batch padding outside the kernel (free reshape + slice).
    return out.reshape(b_pad, dim)[:b]


# -------------------------------------------------------------------------------- test
if __name__ == "__main__":
    key = jax.random.PRNGKey(0)
    k1, k2, k3 = jax.random.split(key, 3)

    # 1) Packed path (dim < 128): B=8, dim=32 -> pack=4, lanes=128, MXU one-hot expansion.
    b1, d1 = 8, 32
    t1 = jax.random.uniform(k1, (b1,), jnp.float32, 0.0, 1000.0)
    o1 = jax.block_until_ready(sinusoidal_position_embeddings(t1, d1, force_pallas=True))
    r1 = _sinusoidal_jnp(t1, d1)
    assert o1.shape == (b1, d1) and o1.dtype == jnp.float32
    # cos computed as sin(x + pi/2): rounding x + pi/2 at |x| ~ 1e3 adds ~half-ulp of
    # angle error (~6e-5), same order as the f32 reference's own rounding.
    assert jnp.allclose(o1, r1, atol=2e-4, rtol=1e-5), float(jnp.max(jnp.abs(o1 - r1)))

    # 2) Non-packed path (dim >= 128).
    b2, d2 = 16, 128
    t2 = jax.random.uniform(k2, (b2,), jnp.float32, 0.0, 1000.0)
    o2 = jax.block_until_ready(sinusoidal_position_embeddings(t2, d2, force_pallas=True))
    r2 = _sinusoidal_jnp(t2, d2)
    assert o2.shape == (b2, d2)
    assert jnp.allclose(o2, r2, atol=2e-4, rtol=1e-5), float(jnp.max(jnp.abs(o2 - r2)))

    # 3) Odd batch (exercises B-padding) + bf16 output (exercises dtype-aware alignment).
    b3, d3 = 7, 32
    t3 = jax.random.uniform(k3, (b3,), jnp.float32, 0.0, 1000.0)
    o3 = jax.block_until_ready(
        sinusoidal_position_embeddings(t3, d3, out_dtype=jnp.bfloat16, force_pallas=True))
    r3 = _sinusoidal_jnp(t3, d3)
    assert o3.shape == (b3, d3) and o3.dtype == jnp.bfloat16
    assert jnp.allclose(o3.astype(jnp.float32), r3, atol=1e-2), \
        float(jnp.max(jnp.abs(o3.astype(jnp.float32) - r3)))

    # 4) Small-problem fast path (auto, no pallas) still matches.
    o4 = jax.block_until_ready(sinusoidal_position_embeddings(t1, d1))
    assert jnp.allclose(o4, r1, atol=2e-4, rtol=1e-5)

    print("KERNEL_OK")
</pallas_src>

<mosaic_0001>
module attributes {stable_mosaic.version = 11 : i64} {
  func.func @kernel(%arg0: i32, %arg1: memref<2x4xf32, #tpu.memory_space<vmem>>, %arg2: memref<2x128xf32, #tpu.memory_space<vmem>>, %arg3: memref<4x128xf32, #tpu.memory_space<vmem>>, %arg4: memref<2x128xf32, #tpu.memory_space<vmem>>) attributes {dimension_semantics = [#tpu.dimension_semantics<parallel>], iteration_bounds = array<i64: 1>, scalar_prefetch = 0 : i64, scratch_operands = 0 : i64, tpu.core_type = #tpu.core_type<tc>, window_params = [{transform_indices = @transform_0, window_bounds = array<i64: 2, 4>}, {pipeline_mode = #tpu.pipeline_mode<synchronous>, transform_indices = @transform_1, window_bounds = array<i64: 2, 128>}, {pipeline_mode = #tpu.pipeline_mode<synchronous>, transform_indices = @transform_2, window_bounds = array<i64: 4, 128>}, {transform_indices = @transform_3, window_bounds = array<i64: 2, 128>}]} {
    %c0 = arith.constant 0 : index
    %c0_0 = arith.constant 0 : index
    %0 = vector.load %arg1[%c0, %c0_0] : memref<2x4xf32, #tpu.memory_space<vmem>>, vector<2x4xf32>
    %c0_1 = arith.constant 0 : index
    %c0_2 = arith.constant 0 : index
    %1 = vector.load %arg3[%c0_1, %c0_2] : memref<4x128xf32, #tpu.memory_space<vmem>>, vector<4x128xf32>
    %cst = arith.constant dense<0.000000e+00> : vector<2x128xf32>
    %2 = tpu.matmul %0, %1, %cst {dimension_numbers = #tpu.dot_dimension_numbers<[1], [0], [0], [1], [0, 0, 1, 1], [], []>, precision = #tpu.contract_precision<fp32>} : vector<2x4xf32>, vector<4x128xf32>, vector<2x128xf32> -> vector<2x128xf32>
    %c0_3 = arith.constant 0 : index
    %c0_4 = arith.constant 0 : index
    %3 = vector.load %arg2[%c0_3, %c0_4] : memref<2x128xf32, #tpu.memory_space<vmem>>, vector<1x128xf32>
    %4 = vector.broadcast %3 : vector<1x128xf32> to vector<2x128xf32>
    %5 = arith.mulf %2, %4 : vector<2x128xf32>
    %c1 = arith.constant 1 : index
    %c0_5 = arith.constant 0 : index
    %6 = vector.load %arg2[%c1, %c0_5] : memref<2x128xf32, #tpu.memory_space<vmem>>, vector<1x128xf32>
    %7 = vector.broadcast %6 : vector<1x128xf32> to vector<2x128xf32>
    %8 = arith.addf %5, %7 : vector<2x128xf32>
    %9 = math.sin %8 : vector<2x128xf32>
    %c0_6 = arith.constant 0 : index
    %c0_7 = arith.constant 0 : index
    %10 = vector.load %arg4[%c0_6, %c0_7] : memref<2x128xf32, #tpu.memory_space<vmem>>, vector<2x128xf32>
    tpu.vector_store %arg4[%c0_6, %c0_7], %9 {strides = array<i32>} : memref<2x128xf32, #tpu.memory_space<vmem>>, vector<2x128xf32>,
    return
  }
  func.func @transform_0(%arg0: i32) -> (i32, i32) {
    %c0_i32 = arith.constant 0 : i32
    %c0_i32_0 = arith.constant 0 : i32
    return %arg0, %c0_i32 : i32, i32
  }
  func.func @transform_1(%arg0: i32) -> (i32, i32) {
    %c0_i32 = arith.constant 0 : i32
    %c0_i32_0 = arith.constant 0 : i32
    %c0_i32_1 = arith.constant 0 : i32
    return %c0_i32, %c0_i32_0 : i32, i32
  }
  func.func @transform_2(%arg0: i32) -> (i32, i32) {
    %c0_i32 = arith.constant 0 : i32
    %c0_i32_0 = arith.constant 0 : i32
    %c0_i32_1 = arith.constant 0 : i32
    return %c0_i32, %c0_i32_0 : i32, i32
  }
  func.func @transform_3(%arg0: i32) -> (i32, i32) {
    %c0_i32 = arith.constant 0 : i32
    %c0_i32_0 = arith.constant 0 : i32
    return %arg0, %c0_i32 : i32, i32
  }
}

</mosaic_0001>

<bundles_post_ra>
// kernel: tpu_custom_call.1
= control target key start
LH: loop header
LB: loop body
LE: loop exit
PB: predicated region body
PF: predicated region fallthrough
CT: control target
= control target key end

     0   :  { %8 = vsyncpa [#allocation3], 0  ;;  %s828_s0 = inlined_call_operand.hbm [shape: f32[2,4], index: 0, kind: input, shape index: {}]   ;;  %s829_s1 = inlined_call_operand.vmem [shape: f32[2,128], index: 1, kind: input, shape index: {}]   ;;  %s830_s2 = inlined_call_operand.vmem [shape: f32[4,128], index: 2, kind: input, shape index: {}]   ;;  %s831_s3 = inlined_call_operand.hbm [shape: f32[2,128], index: 3, kind: output, shape index: {}]  }
   0x1   :  { %9 = vsyncpa [#allocation4], 0  ;;  %s738_s12 = smov [#allocation2]   ;;  %s690_s16 = scalar_lea.hbm %s828_s0, 32 }
   0x2   :  { %s16_s13 = sshll.u32 %s738_s12, 4  ;;  %p691_p0 = scmp.ne.s32.totalorder %s828_s0, %s690_s16  ;;  %s17_s13 = int_to_ptr.vmem [resolvable:$true] %s16_s13 }
   0x3   :  { %p694_p1 = scmp.lt.u32.totalorder %s690_s16, %s828_s0 }
   0x5   :  { %p696_p2 = pnand %p694_p1, %p691_p0 }
   0x7   :  { %699 = shalt.err (!%p696_p2)
}
   0x8   :  { %s700_s21 = scalar_lea.vmem %s17_s13, 32  ;;  %p705_p4 = scmp.lt.s32.totalorder %s17_s13, %s17_s13 }
   0x9   :  { %p701_p3 = scmp.ne.s32.totalorder %s17_s13, %s700_s21  ;;  %p706_p5 = scmp.lt.s32.totalorder %s700_s21, %s700_s21 }
   0xb   :  { %p707_p6 = por %p706_p5, %p705_p4 }
   0xd   :  { %p708_p7 = pnand %p707_p6, %p701_p3 }
   0xf   :  { %711 = shalt.err (!%p708_p7)
}
  0x10   :  { %19 = dma.hbm_to_vmem [thread:$0]  %s828_s0, 32, %s17_s13, [#allocation3]  }
  0x11   :  { %734 = dma.done.wait [#allocation3], 32  }
  0x12   :  { %735 = vsyncadd [#allocation3], 4294967264  ;;  %v739_v0 = vmov 0.0   ;;  %vm740_vm0 = vmmov 0   ;;  %vm33_vm1 = vcmask 1043456   ;;  %vm29_vm2 = vcmask 31744  }
  0x13   :  { %648 = vmatprep.subr.mxu0 %v739_v0  ;;  %650 = vmatprep.mubr.msk.f32.mxu0 %vm740_vm0, %v739_v0  ;;  %v28_v1 = vld [vmem:[%s830_s2] sm:$0xf]  ;;  %v27_v2 = vld [vmem:[#allocation2] sm:$0x3]  ;;  %v741_v34 = vmov 683565275  }
  0x14   :  { %633 = vmatprep.subr.mxu1 %v739_v0  ;;  %635 = vmatprep.mubr.msk.f32.mxu1 %vm740_vm0, %v739_v0  ;;  %v35_v3 = vsel %vm33_vm1, %v28_v1, 0  ;;  %v31_v4 = vsel %vm29_vm2, %v27_v2, 0  ;;  %v615_v18 = vld [vmem:[%s829_s1] ss:$0 sm:$0xff]  ;;  %v616_v21 = vld [vmem:[%s829_s1 + $0x1] ss:$0 sm:$0xff] }
  0x15   :  { %v38_v5 = vand.u32 4294901760, %v35_v3  ;;  %v103_v6 = vand.u32 4294901760, %v31_v4  ;;  %v742_v36 = vmov 2475754826   ;;  %v743_v39 = vmov 2131351028  }
  0x16   :  { %v744_v42 = vmov 2102212464   ;;  %v745_v45 = vmov 920167782   ;;  %v746_v48 = vmov 1326507024  }
  0x17   :  { %v115_v7 = vsub.f32 %v35_v3, %v38_v5  ;;  %649 = vmatpush3.msra.mxu0 %v38_v5  ;;  %v104_v8 = vsub.f32 %v31_v4, %v103_v6  ;;  %634 = vmatpush3.msra.mxu1 %v38_v5  ;;  %s747_s1 = smov [#allocation5]  }
  0x18   :  { %638 = vmatprep.subr.mxu1 %v739_v0  ;;  %653 = vmatprep.subr.mxu0 %v739_v0  ;;  %s606_s28 = sshll.u32 %s747_s1, 4  ;;  %s607_s28 = int_to_ptr.vmem [resolvable:$true] %s606_s28 }
  0x19   :  { %v105_v9 = vand.u32 4294901760, %v104_v8  ;;  %v116_v10 = vand.u32 4294901760, %v115_v7  ;;  %s712_s29 = scalar_lea.vmem %s607_s28, 32  ;;  %p717_p9 = scmp.lt.s32.totalorder %s607_s28, %s607_s28 }
  0x1a   :  { %p713_p8 = scmp.ne.s32.totalorder %s607_s28, %s712_s29  ;;  %p718_p10 = scmp.lt.s32.totalorder %s712_s29, %s712_s29 }
  0x1b   :  { %651 = vmatmul.mubr.f32.vlgmr.msra.gmra.mrb[0].mxu0 %v105_v9  ;;  %v106_v11 = vsub.f32 %v104_v8, %v105_v9  ;;  %v117_v12 = vsub.f32 %v115_v7, %v116_v10 }
  0x1c   :  { %654 = vmatpush3.msra.mxu0 %v116_v10  ;;  %655 = vmatprep.mubr.msk.f32.mxu0 %vm740_vm0, %v739_v0  ;;  %p719_p11 = por %p718_p10, %p717_p9 }
  0x1d   :  { %v107_v13 = vand.u32 4294901760, %v106_v11  ;;  %v118_v14 = vand.u32 4294901760, %v117_v12  ;;  %658 = vmatprep.subr.mxu0 %v739_v0 }
  0x1e   :  { %p720_p12 = pnand %p719_p11, %p713_p8 }
  0x1f   :  { %636 = vmatmul.mubr.f32.vlgmr.msra.gmra.mrb[0].mxu1 %v107_v13 }
  0x20   :  { %639 = vmatpush3.msra.mxu1 %v118_v14  ;;  %640 = vmatprep.mubr.msk.f32.mxu1 %vm740_vm0, %v739_v0 }
  0x21   :  { %643 = vmatprep.subr.mxu1 %v739_v0 }
  0x23   :  { %656 = vmatmul.mubr.f32.vlgmr.msra.gmra.mrb[0].mxu0 %v103_v6 }
  0x24   :  { %659 = vmatpush3.msra.mxu0 %v38_v5  ;;  %660 = vmatprep.mubr.msk.f32.mxu0 %vm740_vm0, %v739_v0 }
  0x27   :  { %641 = vmatmul.mubr.f32.vlgmr.msra.gmra.mrb[0].mxu1 %v103_v6 }
  0x28   :  { %644 = vmatpush3.msra.mxu1 %v115_v7  ;;  %645 = vmatprep.mubr.msk.f32.mxu1 %vm740_vm0, %v739_v0 }
  0x2b   :  { %661 = vmatmul.mubr.f32.vlgmr.msra.gmra.mrb[0].mxu0 %v103_v6 }
  0x2f   :  { %646 = vmatmul.mubr.f32.vlgmr.msra.gmra.mrb[0].mxu1 %v104_v8 }
  0xfe   :  { %v479_v15 = vpop.f32.mrb[0].mxu0 }
  0xff   :  { %v662_v16 = vpop.f32.mrb[1].mxu0 }
 0x102   :  { %v259_v17 = vpop.f32.mrb[0].mxu1 }
 0x103   :  { %v663_v19 = vadd.f32 %v479_v15, %v259_v17  ;;  %v647_v20 = vpop.f32.mrb[1].mxu1 }
 0x105   :  { %v488_v22 = vmul.f32 %v663_v19, %v615_v18 }
 0x107   :  { %v795_v23 = vadd.f32 %v616_v21, %v488_v22 }
 0x109   :  { %v498_v24 = vand.u32 2139095040, %v795_v23  ;;  %v495_v28 = vand.u32 2147483647, %v795_v23  ;;  %vm497_vm10 = vcmp.lt.s32.totalorder %v795_v23, 0  ;;  %vm587_vm15 = vweird.f32 %v795_v23 }
 0x10b   :  { %v499_v25 = vshrl.u32 %v498_v24, 23  ;;  %v502_v32 = vand.u32 8388607, %v495_v28  ;;  %vm496_vm11 = vcmp.le.f32.partialorder %v495_v28, 0.7853982 }
 0x10d   :  { %v617_v26 = vadd.s32 4294967169, %v499_v25  ;;  %v503_v50 = vor.u32 8388608, %v502_v32 }
 0x10f   :  { %v505_v27 = vadd.s32 1, %v617_v26  ;;  %v543_v0 = vshll.u32 %v503_v50, 8 }
 0x111   :  { %vm506_vm3 = vcmp.gt.s32.totalorder %v505_v27, 0 }
 0x112   :  { %v507_v29 = vsel %vm506_vm3, %v505_v27, 0 }
 0x113   :  { %v509_v30 = vand.u32 31, %v507_v29  ;;  %v508_v33 = vshrl.u32 %v507_v29, 5 }
 0x115   :  { %v510_v31 = vsub.s32 32, %v509_v30  ;;  %v512_v35 = vshll.u32 %v741_v34, %v509_v30  ;;  %v515_v37 = vshll.u32 %v742_v36, %v509_v30  ;;  %v518_v41 = vshll.u32 %v743_v39, %v509_v30 }
 0x116   :  { %v521_v44 = vshll.u32 %v744_v42, %v509_v30  ;;  %v524_v47 = vshll.u32 %v745_v45, %v509_v30  ;;  %vm527_vm4 = vcmp.lt.s32.totalorder %v508_v33, 1  ;;  %vm530_vm5 = vcmp.lt.s32.totalorder %v508_v33, 4 }
 0x117   :  { %v513_v38 = vshrl.u32 %v742_v36, %v510_v31  ;;  %v516_v40 = vshrl.u32 %v743_v39, %v510_v31  ;;  %v519_v43 = vshrl.u32 %v744_v42, %v510_v31  ;;  %v522_v46 = vshrl.u32 %v745_v45, %v510_v31 }
 0x118   :  { %v525_v49 = vshrl.u32 %v746_v48, %v510_v31  ;;  %v511_v59 = vshrl.u32 %v741_v34, %v510_v31  ;;  %vm529_vm6 = vcmp.lt.s32.totalorder %v508_v33, 3  ;;  %vm528_vm7 = vcmp.lt.s32.totalorder %v508_v33, 2 }
 0x119   :  { %v514_v51 = vor.u32 %v513_v38, %v512_v35  ;;  %v517_v52 = vor.u32 %v516_v40, %v515_v37  ;;  %v520_v53 = vor.u32 %v519_v43, %v518_v41  ;;  %v523_v54 = vor.u32 %v522_v46, %v521_v44 }
 0x11a   :  { %v526_v55 = vor.u32 %v525_v49, %v524_v47 }
 0x11b   :  { %v532_v56 = vsel %vm530_vm5, %v520_v53, 2102212464  ;;  %v535_v57 = vsel %vm527_vm4, %v514_v51, %v517_v52  ;;  %v539_v58 = vsel %vm527_vm4, %v517_v52, %v520_v53  ;;  %v536_v60 = vsel %vm530_vm5, %v523_v54, 920167782 }
 0x11c   :  { %v540_v61 = vsel %vm530_vm5, %v526_v55, 1326507024  ;;  %v537_v62 = vsel %vm529_vm6, %v520_v53, %v536_v60  ;;  %v531_v1 = vsel %vm527_vm4, %v511_v59, %v514_v51  ;;  %v533_v2 = vsel %vm529_vm6, %v517_v52, %v532_v56 }
 0x11d   :  { %v541_v63 = vsel %vm529_vm6, %v523_v54, %v540_v61  ;;  %v538_v3 = vsel %vm528_vm7, %v535_v57, %v537_v62  ;;  %v534_v9 = vsel %vm528_vm7, %v531_v1, %v533_v2 }
 0x11e   :  { %v542_v4 = vsel %vm528_vm7, %v539_v58, %v541_v63  ;;  %v804_v7 = vmul.u32.u64.low %v543_v0, %v538_v3  ;;  %v805_v8 = vmul.u32.u64.high %v543_v0, %v538_v3, %v804_v7  ;;  %v550_v11 = vmul.u32 %v543_v0, %v534_v9 }
 0x11f   :  { %v801_v5 = vmul.u32.u64.low %v543_v0, %v542_v4  ;;  %v802_v6 = vmul.u32.u64.high %v543_v0, %v542_v4, %v801_v5 }
 0x120   :  { %v553_v10 = vadd.s32 1, %v805_v8 }
 0x121   :  { %vm552_vm8 = vc.u32 %v802_v6, %v804_v7  ;;  %v551_v24 = vadd.s32 %v804_v7, %v802_v6 }
 0x122   :  { %v554_v12 = vsel %vm552_vm8, %v553_v10, %v805_v8 }
 0x123   :  { %v555_v13 = vadd.s32 %v554_v12, %v550_v11 }
 0x125   :  { %v556_v14 = vadd.s32 536870912, %v555_v13 }
 0x127   :  { %v557_v15 = vshrl.u32 %v556_v14, 30 }
 0x129   :  { %v558_v16 = vshll.u32 %v557_v15, 30  ;;  %v581_v37 = vsub.s32 4, %v557_v15 }
 0x12b   :  { %v559_v17 = vsub.s32 %v555_v13, %v558_v16  ;;  %v582_v40 = vsel %vm497_vm10, %v581_v37, %v557_v15 }
 0x12c   :  { %v584_v42 = vsel %vm496_vm11, 0, %v582_v40 }
 0x12d   :  { %v561_v18 = vsub.s32 0, %v559_v17  ;;  %v588_v43 = vadd.s32 3, %v584_v42 }
 0x12f   :  { %v618_v19 = vmin.u32 %v561_v18, %v559_v17  ;;  %v589_v44 = vand.u32 3, %v588_v43 }
 0x131   :  { %v563_v20 = vclz %v618_v19  ;;  %vm594_vm12 = vcmp.eq.s32.totalorder %v589_v44, 2  ;;  %vm591_vm13 = vcmp.eq.s32.totalorder %v589_v44, 0  ;;  %vm590_vm14 = vcmp.lt.s32.totalorder %v589_v44, 2 }
 0x133   :  { %v619_v21 = vadd.s32 4294967294, %v563_v20 }
 0x135   :  { %vm620_vm9 = vcmp.lt.s32.totalorder %v619_v21, 0 }
 0x136   :  { %v566_v22 = vsel %vm620_vm9, 0, %v619_v21 }
 0x137   :  { %v567_v25 = vsub.s32 32, %v566_v22  ;;  %v571_v26 = vsub.s32 4294967266, %v566_v22  ;;  %v568_v27 = vshll.u32 %v559_v17, %v566_v22 }
 0x139   :  { %v569_v29 = vshrl.u32 %v551_v24, %v567_v25  ;;  %v572_v30 = vadd.s32 127, %v571_v26 }
 0x13b   :  { %v570_v31 = vor.u32 %v569_v29, %v568_v27  ;;  %v573_v32 = vshll.u32 %v572_v30, 23 }
 0x13d   :  { %v574_v33 = vor.u32 4788187, %v573_v32  ;;  %v577_v35 = vcvt.s32.f32 %v570_v31 }
 0x13f   :  { %v575_v34 = vand.u32 2147483647, %v574_v33 }
 0x141   :  { %v578_v36 = vmul.f32 %v577_v35, %v575_v34 }
 0x143   :  { %v579_v38 = vxor.u32 2147483648, %v578_v36 }
 0x145   :  { %v580_v39 = vsel %vm497_vm10, %v579_v38, %v578_v36 }
 0x146   :  { %v583_v41 = vsel %vm496_vm11, %v795_v23, %v580_v39 }
 0x147   :  { %686 = vcosq.f32 %v583_v41 }
 0x148   :  { %688 = vsinq.f32 %v583_v41 }
 0x151   :  { %v687_v45 = vpop.eup %686 }
 0x152   :  { %v689_v46 = vpop.eup %688  ;;  %v595_v47 = vxor.u32 2147483648, %v687_v45 }
 0x153   :  { %v592_v48 = vxor.u32 2147483648, %v689_v46 }
 0x154   :  { %v596_v49 = vsel %vm594_vm12, %v595_v47, %v689_v46 }
 0x155   :  { %v593_v28 = vsel %vm591_vm13, %v687_v45, %v592_v48 }
 0x156   :  { %v597_v50 = vsel %vm590_vm14, %v593_v28, %v596_v49 }
 0x157   :  { %v598_v51 = vsel %vm587_vm15, nan, %v597_v50 }
 0x158   :  { %599 = vst [vmem:[#allocation5] sm:$0x3] %v598_v51 }
 0x159   :  { %723 = shalt.err (!%p720_p12)
}
 0x15a   :  { %s724_s5 = scalar_lea.hbm %s831_s3, 32 }
 0x15b   :  { %p725_p13 = scmp.ne.s32.totalorder %s831_s3, %s724_s5  ;;  %p728_p0 = scmp.lt.u32.totalorder %s724_s5, %s831_s3 }
 0x15d   :  { %p730_p1 = pnand %p728_p0, %p725_p13 }
 0x15f   :  { %733 = shalt.err (!%p730_p1)
}
 0x160   :  { %609 = dma.vmem_to_hbm [thread:$0]  %s607_s28, 32, %s831_s3, [#allocation4]  }
 0x161   :  { %736 = dma.done.wait [#allocation4], 32  }
 0x162   :  { %737 = vsyncadd [#allocation4], 4294967264 }
 0x163   :  { %613 = vsyncpa [#allocation3], 1 }
 0x164   :  { %614 = vsyncpa [#allocation4], 1 }

</bundles_post_ra>
